<compile_context>
chip_gen: v6e
topology: v6e:2x2x1
jax: 0.10.0
libtpu: 0.0.40
codegen_flags: <defaults>
</compile_context>

<pallas_src>
import functools

import jax
import jax.numpy as jnp
from jax.experimental import pallas as pl
from jax.experimental.pallas import tpu as pltpu


def _round_up(x, m):
    return ((x + m - 1) // m) * m


def _layer_norm(x, gamma, beta, inv_n, eps=1e-5):
    # PyTorch nn.LayerNorm semantics (biased variance, eps=1e-5), but the
    # moments are taken with a 1/E compile-time constant so the zero-padded
    # feature lanes (which are exactly 0 by construction) do not perturb them.
    mean = jnp.sum(x, axis=-1, keepdims=True) * inv_n
    var = jnp.sum(x * x, axis=-1, keepdims=True) * inv_n - mean * mean
    return (x - mean) * jax.lax.rsqrt(var + eps) * gamma + beta


def mlp_kernel(cols_ref, wc_ref, wsq_ref, w1_ref, b1_ref, w2_ref, vec_ref,
               o_ref, *, inv_hw, inv_e):
    bb, hw, kkc = cols_ref.shape

    # packed (8, E_pad) row-vector tile: biases / LayerNorm affine params
    bc, bd, brt = vec_ref[0:1, :], vec_ref[1:2, :], vec_ref[2:3, :]
    g1, be1 = vec_ref[3:4, :], vec_ref[4:5, :]
    b2 = vec_ref[5:6, :]
    g2, be2 = vec_ref[6:7, :], vec_ref[7:8, :]

    # ---- Conv2d(5x5, padding=2) as an im2col matmul (bf16 in, f32 acc),
    # ---- ReLU, then adaptive_avg_pool2d((1,1)) as a per-sample spatial mean.
    y = jnp.dot(cols_ref[...].reshape(bb * hw, kkc), wc_ref[...],
                preferred_element_type=jnp.float32)
    y = jnp.maximum(y + bc, 0.0)
    pooled = jnp.sum(y.reshape(bb, hw, -1), axis=1) * inv_hw       # (bb, E_pad)

    # ---- linear_Wd(cat((p, p), -1))  with the duplicated-concat weight folded
    f = jnp.dot(pooled, wsq_ref[0], preferred_element_type=jnp.float32) + bd

    # ---- seq_len==1 MultiheadAttention + linear_Wt + residual, pre-composed:
    # ---- resid = f @ (I + Wv@Wo@Wt) + b_fused   (dropout: eval mode)
    resid = jnp.dot(f, wsq_ref[1], preferred_element_type=jnp.float32) + brt
    ln1 = _layer_norm(resid, g1, be1, inv_e)

    # ---- FFN: Linear(E,4E) -> ReLU -> Linear(4E,E) -> Dropout(eval) ; LayerNorm
    h = jnp.maximum(
        jnp.dot(ln1, w1_ref[...], preferred_element_type=jnp.float32)
        + b1_ref[...], 0.0)
    ffn = jnp.dot(h, w2_ref[...], preferred_element_type=jnp.float32) + b2
    o_ref[0] = _layer_norm(ln1 + ffn, g2, be2, inv_e)


def _full_spec(shape):
    zeros = (0,) * len(shape)
    return pl.BlockSpec(shape, lambda b, _z=zeros: _z)


def mlp_forward(x_nhwc, params, *, kernel_size=5):
    B, H, W, Cin = x_nhwc.shape
    K = kernel_size
    E = params["conv_w"].shape[-1]
    pad = (K - 1) // 2
    hw = H * W
    Ep = _round_up(E, 128)
    Hp = _round_up(4 * E, 128)

    # batch blocking: fill sublanes, but keep >= 2 grid steps when possible so
    # v7x's two TensorCores both get work (grid axis is marked "parallel").
    block_b = min(8, max(1, B // 2)) if B > 1 else 1
    grid_b = pl.cdiv(B, block_b)
    B_pad = grid_b * block_b

    # ---- im2col (pure data movement, stays in plain JAX) ----
    # TODO(synk): for large H/W move im2col inside the kernel (shifted slices
    # of a resident input tile) to avoid the 25x HBM amplification.
    xp = jnp.pad(x_nhwc, ((0, 0), (pad, pad), (pad, pad), (0, 0)))
    patches = [xp[:, kh:kh + H, kw:kw + W, :]
               for kh in range(K) for kw in range(K)]
    kkc = K * K * Cin
    kkc_pad = _round_up(kkc, 128)
    cols = jnp.concatenate(patches, axis=-1).reshape(B, hw, kkc)
    cols = jnp.pad(cols, ((0, B_pad - B), (0, 0), (0, kkc_pad - kkc)))
    cols = cols.astype(jnp.bfloat16)

    # ---- one-off parameter folding / packing (wrapper-side) ----
    w_conv = jnp.pad(params["conv_w"].reshape(kkc, E),
                     ((0, kkc_pad - kkc), (0, Ep - E))).astype(jnp.bfloat16)

    wd_folded = params["wd"][:E, :] + params["wd"][E:, :]          # concat fold
    w_rt = (jnp.eye(E, dtype=jnp.float32)
            + params["wv"] @ params["wo"] @ params["wt"])          # attn+Wt+res
    b_rt = (params["bv"] @ params["wo"] @ params["wt"]
            + params["bo"] @ params["wt"] + params["bt"])

    def pad2(a, r, c):
        return jnp.pad(a, ((0, r - a.shape[0]), (0, c - a.shape[1])))

    w_stack = jnp.stack([pad2(wd_folded, Ep, Ep), pad2(w_rt, Ep, Ep)])
    w1 = pad2(params["w1"], Ep, Hp)
    b1 = pad2(params["b1"], 1, Hp)
    w2 = pad2(params["w2"], Hp, Ep)
    vecs = jnp.concatenate(
        [pad2(v, 1, Ep) for v in (
            params["conv_b"], params["bd"], b_rt,
            params["ln1_g"], params["ln1_b"],
            params["b2"], params["ln2_g"], params["ln2_b"])], axis=0)  # (8, Ep)

    kernel = functools.partial(mlp_kernel, inv_hw=1.0 / hw, inv_e=1.0 / E)

    out = pl.pallas_call(
        kernel,
        out_shape=jax.ShapeDtypeStruct((grid_b, block_b, Ep), jnp.float32),
        grid_spec=pltpu.PrefetchScalarGridSpec(
            num_scalar_prefetch=0,
            grid=(grid_b,),
            in_specs=[pl.BlockSpec((block_b, hw, kkc_pad), lambda b: (b, 0, 0)),
                      _full_spec(w_conv.shape),
                      _full_spec(w_stack.shape),
                      _full_spec(w1.shape),
                      _full_spec(b1.shape),
                      _full_spec(w2.shape),
                      _full_spec(vecs.shape)],
            out_specs=pl.BlockSpec((1, block_b, Ep), lambda b: (b, 0, 0)),
        ),
        compiler_params=pltpu.CompilerParams(
            dimension_semantics=("parallel",)),
    )(cols, w_conv, w_stack, w1, b1, w2, vecs)

    return out.reshape(B_pad, Ep)[:B, :E]          # (B, E) == M_l_plus_1


def init_params(key, in_channels, conv_out_channels, num_heads, kernel_size=5):
    assert conv_out_channels % num_heads == 0
    E = conv_out_channels
    K = kernel_size
    ks = jax.random.split(key, 16)
    s = 0.05
    n = lambda k, shape: jax.random.normal(k, shape, jnp.float32) * s
    return {
        # Conv2d weights stored as (kh, kw, C_in, C_out)
        "conv_w": n(ks[0], (K, K, in_channels, E)),
        "conv_b": n(ks[1], (1, E)),
        # all Linear weights stored as (in_features, out_features)
        "wd": n(ks[2], (2 * E, E)), "bd": n(ks[3], (1, E)),
        # MultiheadAttention: value slice of in_proj + out_proj
        "wv": n(ks[4], (E, E)), "bv": n(ks[5], (1, E)),
        "wo": n(ks[6], (E, E)), "bo": n(ks[7], (1, E)),
        "wt": n(ks[8], (E, E)), "bt": n(ks[9], (1, E)),
        "ln1_g": jnp.ones((1, E), jnp.float32),
        "ln1_b": jnp.zeros((1, E), jnp.float32),
        "w1": n(ks[10], (E, 4 * E)), "b1": n(ks[11], (1, 4 * E)),
        "w2": n(ks[12], (4 * E, E)), "b2": n(ks[13], (1, E)),
        "ln2_g": jnp.ones((1, E), jnp.float32),
        "ln2_b": jnp.zeros((1, E), jnp.float32),
    }


def reference_forward(x_nhwc, params, kernel_size=5):
    # Pure-JAX f32 reference replicating the PyTorch forward (eval mode),
    # without any weight folding — validates the in-kernel algebra.
    B, H, W, Cin = x_nhwc.shape
    K = kernel_size
    E = params["conv_w"].shape[-1]
    pad = (K - 1) // 2
    xp = jnp.pad(x_nhwc, ((0, 0), (pad, pad), (pad, pad), (0, 0)))
    patches = [xp[:, kh:kh + H, kw:kw + W, :]
               for kh in range(K) for kw in range(K)]
    cols = jnp.concatenate(patches, axis=-1).reshape(B, H * W, K * K * Cin)
    y = jnp.maximum(cols @ params["conv_w"].reshape(K * K * Cin, E)
                    + params["conv_b"], 0.0)
    pooled = jnp.mean(y, axis=1)
    f = jnp.concatenate([pooled, pooled], -1) @ params["wd"] + params["bd"]
    v = f @ params["wv"] + params["bv"]        # softmax over a single key == 1
    attn = v @ params["wo"] + params["bo"]
    resid = f + attn @ params["wt"] + params["bt"]

    def ln(x, g, b, eps=1e-5):
        m = jnp.mean(x, -1, keepdims=True)
        var = jnp.mean((x - m) ** 2, -1, keepdims=True)
        return (x - m) * jax.lax.rsqrt(var + eps) * g + b

    ln1 = ln(resid, params["ln1_g"], params["ln1_b"])
    h = jnp.maximum(ln1 @ params["w1"] + params["b1"], 0.0)
    ffn = h @ params["w2"] + params["b2"]
    return ln(ln1 + ffn, params["ln2_g"], params["ln2_b"])


if __name__ == "__main__":
    key = jax.random.PRNGKey(0)
    k_x, k_p = jax.random.split(key)

    # M_0_input: (batch, n_dim1, n_dim2, d_channels) == (B, H, W, C_in)
    B, H, W, Cin = 2, 16, 16, 4
    conv_out_channels, num_heads = 32, 4

    x = jax.random.normal(k_x, (B, H, W, Cin), jnp.float32)
    params = init_params(k_p, Cin, conv_out_channels, num_heads)

    out = mlp_forward(x, params)
    out = jax.block_until_ready(out)
    assert out.shape == (B, conv_out_channels)
    assert bool(jnp.all(jnp.isfinite(out)))

    # correctness vs. unfolded f32 reference (bf16 conv operands + weight
    # re-association account for the tolerance)
    ref = reference_forward(x, params)
    err = float(jnp.max(jnp.abs(out - ref)))
    assert err < 5e-2, f"max abs error vs reference: {err}"
    print("KERNEL_OK")
</pallas_src>

<mosaic_0001>
module attributes {stable_mosaic.version = 11 : i64} {
  func.func @mlp_kernel(%arg0: i32, %arg1: memref<1x256x128xbf16, #tpu.memory_space<vmem>>, %arg2: memref<128x128xbf16, #tpu.memory_space<vmem>>, %arg3: memref<2x128x128xf32, #tpu.memory_space<vmem>>, %arg4: memref<128x128xf32, #tpu.memory_space<vmem>>, %arg5: memref<1x128xf32, #tpu.memory_space<vmem>>, %arg6: memref<128x128xf32, #tpu.memory_space<vmem>>, %arg7: memref<8x128xf32, #tpu.memory_space<vmem>>, %arg8: memref<1x1x128xf32, #tpu.memory_space<vmem>>) attributes {dimension_semantics = [#tpu.dimension_semantics<parallel>], iteration_bounds = array<i64: 2>, scalar_prefetch = 0 : i64, scratch_operands = 0 : i64, tpu.core_type = #tpu.core_type<tc>, window_params = [{transform_indices = @transform_0, window_bounds = array<i64: 1, 256, 128>}, {pipeline_mode = #tpu.pipeline_mode<synchronous>, transform_indices = @transform_1, window_bounds = array<i64: 128, 128>}, {pipeline_mode = #tpu.pipeline_mode<synchronous>, transform_indices = @transform_2, window_bounds = array<i64: 2, 128, 128>}, {pipeline_mode = #tpu.pipeline_mode<synchronous>, transform_indices = @transform_3, window_bounds = array<i64: 128, 128>}, {pipeline_mode = #tpu.pipeline_mode<synchronous>, transform_indices = @transform_4, window_bounds = array<i64: 1, 128>}, {pipeline_mode = #tpu.pipeline_mode<synchronous>, transform_indices = @transform_5, window_bounds = array<i64: 128, 128>}, {pipeline_mode = #tpu.pipeline_mode<synchronous>, transform_indices = @transform_6, window_bounds = array<i64: 8, 128>}, {transform_indices = @transform_7, window_bounds = array<i64: 1, 1, 128>}]} {
    %c0 = arith.constant 0 : index
    %c0_0 = arith.constant 0 : index
    %0 = vector.load %arg7[%c0, %c0_0] : memref<8x128xf32, #tpu.memory_space<vmem>>, vector<1x128xf32>
    %c1 = arith.constant 1 : index
    %c0_1 = arith.constant 0 : index
    %1 = vector.load %arg7[%c1, %c0_1] : memref<8x128xf32, #tpu.memory_space<vmem>>, vector<1x128xf32>
    %c2 = arith.constant 2 : index
    %c0_2 = arith.constant 0 : index
    %2 = vector.load %arg7[%c2, %c0_2] : memref<8x128xf32, #tpu.memory_space<vmem>>, vector<1x128xf32>
    %c3 = arith.constant 3 : index
    %c0_3 = arith.constant 0 : index
    %3 = vector.load %arg7[%c3, %c0_3] : memref<8x128xf32, #tpu.memory_space<vmem>>, vector<1x128xf32>
    %c4 = arith.constant 4 : index
    %c0_4 = arith.constant 0 : index
    %4 = vector.load %arg7[%c4, %c0_4] : memref<8x128xf32, #tpu.memory_space<vmem>>, vector<1x128xf32>
    %c5 = arith.constant 5 : index
    %c0_5 = arith.constant 0 : index
    %5 = vector.load %arg7[%c5, %c0_5] : memref<8x128xf32, #tpu.memory_space<vmem>>, vector<1x128xf32>
    %c6 = arith.constant 6 : index
    %c0_6 = arith.constant 0 : index
    %6 = vector.load %arg7[%c6, %c0_6] : memref<8x128xf32, #tpu.memory_space<vmem>>, vector<1x128xf32>
    %c7 = arith.constant 7 : index
    %c0_7 = arith.constant 0 : index
    %7 = vector.load %arg7[%c7, %c0_7] : memref<8x128xf32, #tpu.memory_space<vmem>>, vector<1x128xf32>
    %c0_8 = arith.constant 0 : index
    %c0_9 = arith.constant 0 : index
    %c0_10 = arith.constant 0 : index
    %8 = vector.load %arg1[%c0_8, %c0_9, %c0_10] : memref<1x256x128xbf16, #tpu.memory_space<vmem>>, vector<1x256x128xbf16>
    %9 = vector.shape_cast %8 : vector<1x256x128xbf16> to vector<256x128xbf16>
    %c0_11 = arith.constant 0 : index
    %c0_12 = arith.constant 0 : index
    %10 = vector.load %arg2[%c0_11, %c0_12] : memref<128x128xbf16, #tpu.memory_space<vmem>>, vector<128x128xbf16>
    %cst = arith.constant dense<0.000000e+00> : vector<256x128xf32>
    %11 = tpu.matmul %9, %10, %cst {dimension_numbers = #tpu.dot_dimension_numbers<[1], [0], [0], [1], [0, 0, 1, 1], [], []>} : vector<256x128xbf16>, vector<128x128xbf16>, vector<256x128xf32> -> vector<256x128xf32>
    %12 = vector.broadcast %0 : vector<1x128xf32> to vector<256x128xf32>
    %13 = arith.addf %11, %12 : vector<256x128xf32>
    %cst_13 = arith.constant 0.000000e+00 : f32
    %14 = vector.broadcast %cst_13 : f32 to vector<256x128xf32>
    %15 = arith.maximumf %13, %14 : vector<256x128xf32>
    %16 = vector.shape_cast %15 : vector<256x128xf32> to vector<1x256x128xf32>
    %cst_14 = arith.constant dense<0.000000e+00> : vector<1x128xf32>
    %17 = vector.multi_reduction <add>, %16, %cst_14 [1] : vector<1x256x128xf32> to vector<1x128xf32>
    %cst_15 = arith.constant 3.906250e-03 : f32
    %18 = vector.broadcast %cst_15 : f32 to vector<1x128xf32>
    %19 = arith.mulf %17, %18 : vector<1x128xf32>
    %c0_16 = arith.constant 0 : index
    %c0_17 = arith.constant 0 : index
    %c0_18 = arith.constant 0 : index
    %20 = vector.load %arg3[%c0_16, %c0_17, %c0_18] : memref<2x128x128xf32, #tpu.memory_space<vmem>>, vector<1x128x128xf32>
    %21 = vector.shape_cast %20 : vector<1x128x128xf32> to vector<128x128xf32>
    %cst_19 = arith.constant dense<0.000000e+00> : vector<1x128xf32>
    %22 = tpu.matmul %19, %21, %cst_19 {dimension_numbers = #tpu.dot_dimension_numbers<[1], [0], [0], [1], [0, 0, 1, 1], [], []>} : vector<1x128xf32>, vector<128x128xf32>, vector<1x128xf32> -> vector<1x128xf32>
    %23 = arith.addf %22, %1 : vector<1x128xf32>
    %c1_20 = arith.constant 1 : index
    %c0_21 = arith.constant 0 : index
    %c0_22 = arith.constant 0 : index
    %24 = vector.load %arg3[%c1_20, %c0_21, %c0_22] : memref<2x128x128xf32, #tpu.memory_space<vmem>>, vector<1x128x128xf32>
    %25 = vector.shape_cast %24 : vector<1x128x128xf32> to vector<128x128xf32>
    %cst_23 = arith.constant dense<0.000000e+00> : vector<1x128xf32>
    %26 = tpu.matmul %23, %25, %cst_23 {dimension_numbers = #tpu.dot_dimension_numbers<[1], [0], [0], [1], [0, 0, 1, 1], [], []>} : vector<1x128xf32>, vector<128x128xf32>, vector<1x128xf32> -> vector<1x128xf32>
    %27 = arith.addf %26, %2 : vector<1x128xf32>
    %cst_24 = arith.constant dense<0.000000e+00> : vector<1xf32>
    %28 = vector.multi_reduction <add>, %27, %cst_24 [1] : vector<1x128xf32> to vector<1xf32>
    %29 = vector.shape_cast %28 : vector<1xf32> to vector<1x1xf32>
    %cst_25 = arith.constant 3.125000e-02 : f32
    %30 = vector.broadcast %cst_25 : f32 to vector<1x1xf32>
    %31 = arith.mulf %29, %30 : vector<1x1xf32>
    %32 = arith.mulf %27, %27 : vector<1x128xf32>
    %cst_26 = arith.constant dense<0.000000e+00> : vector<1xf32>
    %33 = vector.multi_reduction <add>, %32, %cst_26 [1] : vector<1x128xf32> to vector<1xf32>
    %34 = vector.shape_cast %33 : vector<1xf32> to vector<1x1xf32>
    %cst_27 = arith.constant 3.125000e-02 : f32
    %35 = vector.broadcast %cst_27 : f32 to vector<1x1xf32>
    %36 = arith.mulf %34, %35 : vector<1x1xf32>
    %37 = arith.mulf %31, %31 : vector<1x1xf32>
    %38 = arith.subf %36, %37 : vector<1x1xf32>
    %39 = vector.broadcast %31 : vector<1x1xf32> to vector<1x128xf32>
    %40 = arith.subf %27, %39 : vector<1x128xf32>
    %cst_28 = arith.constant 9.99999974E-6 : f32
    %41 = vector.broadcast %cst_28 : f32 to vector<1x1xf32>
    %42 = arith.addf %38, %41 : vector<1x1xf32>
    %43 = math.rsqrt %42 : vector<1x1xf32>
    %44 = vector.broadcast %43 : vector<1x1xf32> to vector<1x128xf32>
    %45 = arith.mulf %40, %44 : vector<1x128xf32>
    %46 = arith.mulf %45, %3 : vector<1x128xf32>
    %47 = arith.addf %46, %4 : vector<1x128xf32>
    %c0_29 = arith.constant 0 : index
    %c0_30 = arith.constant 0 : index
    %48 = vector.load %arg4[%c0_29, %c0_30] : memref<128x128xf32, #tpu.memory_space<vmem>>, vector<128x128xf32>
    %cst_31 = arith.constant dense<0.000000e+00> : vector<1x128xf32>
    %49 = tpu.matmul %47, %48, %cst_31 {dimension_numbers = #tpu.dot_dimension_numbers<[1], [0], [0], [1], [0, 0, 1, 1], [], []>} : vector<1x128xf32>, vector<128x128xf32>, vector<1x128xf32> -> vector<1x128xf32>
    %c0_32 = arith.constant 0 : index
    %c0_33 = arith.constant 0 : index
    %50 = vector.load %arg5[%c0_32, %c0_33] : memref<1x128xf32, #tpu.memory_space<vmem>>, vector<1x128xf32>
    %51 = arith.addf %49, %50 : vector<1x128xf32>
    %cst_34 = arith.constant 0.000000e+00 : f32
    %52 = vector.broadcast %cst_34 : f32 to vector<1x128xf32>
    %53 = arith.maximumf %51, %52 : vector<1x128xf32>
    %c0_35 = arith.constant 0 : index
    %c0_36 = arith.constant 0 : index
    %54 = vector.load %arg6[%c0_35, %c0_36] : memref<128x128xf32, #tpu.memory_space<vmem>>, vector<128x128xf32>
    %cst_37 = arith.constant dense<0.000000e+00> : vector<1x128xf32>
    %55 = tpu.matmul %53, %54, %cst_37 {dimension_numbers = #tpu.dot_dimension_numbers<[1], [0], [0], [1], [0, 0, 1, 1], [], []>} : vector<1x128xf32>, vector<128x128xf32>, vector<1x128xf32> -> vector<1x128xf32>
    %56 = arith.addf %55, %5 : vector<1x128xf32>
    %57 = arith.addf %47, %56 : vector<1x128xf32>
    %cst_38 = arith.constant dense<0.000000e+00> : vector<1xf32>
    %58 = vector.multi_reduction <add>, %57, %cst_38 [1] : vector<1x128xf32> to vector<1xf32>
    %59 = vector.shape_cast %58 : vector<1xf32> to vector<1x1xf32>
    %cst_39 = arith.constant 3.125000e-02 : f32
    %60 = vector.broadcast %cst_39 : f32 to vector<1x1xf32>
    %61 = arith.mulf %59, %60 : vector<1x1xf32>
    %62 = arith.mulf %57, %57 : vector<1x128xf32>
    %cst_40 = arith.constant dense<0.000000e+00> : vector<1xf32>
    %63 = vector.multi_reduction <add>, %62, %cst_40 [1] : vector<1x128xf32> to vector<1xf32>
    %64 = vector.shape_cast %63 : vector<1xf32> to vector<1x1xf32>
    %cst_41 = arith.constant 3.125000e-02 : f32
    %65 = vector.broadcast %cst_41 : f32 to vector<1x1xf32>
    %66 = arith.mulf %64, %65 : vector<1x1xf32>
    %67 = arith.mulf %61, %61 : vector<1x1xf32>
    %68 = arith.subf %66, %67 : vector<1x1xf32>
    %69 = vector.broadcast %61 : vector<1x1xf32> to vector<1x128xf32>
    %70 = arith.subf %57, %69 : vector<1x128xf32>
    %cst_42 = arith.constant 9.99999974E-6 : f32
    %71 = vector.broadcast %cst_42 : f32 to vector<1x1xf32>
    %72 = arith.addf %68, %71 : vector<1x1xf32>
    %73 = math.rsqrt %72 : vector<1x1xf32>
    %74 = vector.broadcast %73 : vector<1x1xf32> to vector<1x128xf32>
    %75 = arith.mulf %70, %74 : vector<1x128xf32>
    %76 = arith.mulf %75, %6 : vector<1x128xf32>
    %77 = arith.addf %76, %7 : vector<1x128xf32>
    %c0_43 = arith.constant 0 : index
    %c0_44 = arith.constant 0 : index
    %c0_45 = arith.constant 0 : index
    %78 = vector.load %arg8[%c0_43, %c0_44, %c0_45] : memref<1x1x128xf32, #tpu.memory_space<vmem>>, vector<1x1x128xf32>
    %79 = vector.shape_cast %78 : vector<1x1x128xf32> to vector<1x128xf32>
    %80 = vector.shape_cast %77 : vector<1x128xf32> to vector<1x1x128xf32>
    tpu.vector_store %arg8[%c0_43, %c0_44, %c0_45], %80 {strides = array<i32>} : memref<1x1x128xf32, #tpu.memory_space<vmem>>, vector<1x1x128xf32>,
    return
  }
  func.func @transform_0(%arg0: i32) -> (i32, i32, i32) {
    %c0_i32 = arith.constant 0 : i32
    %c0_i32_0 = arith.constant 0 : i32
    %c0_i32_1 = arith.constant 0 : i32
    return %arg0, %c0_i32, %c0_i32_0 : i32, i32, i32
  }
  func.func @transform_1(%arg0: i32) -> (i32, i32) {
    %c0_i32 = arith.constant 0 : i32
    %c0_i32_0 = arith.constant 0 : i32
    %c0_i32_1 = arith.constant 0 : i32
    return %c0_i32, %c0_i32_0 : i32, i32
  }
  func.func @transform_2(%arg0: i32) -> (i32, i32, i32) {
    %c0_i32 = arith.constant 0 : i32
    %c0_i32_0 = arith.constant 0 : i32
    %c0_i32_1 = arith.constant 0 : i32
    %c0_i32_2 = arith.constant 0 : i32
    return %c0_i32, %c0_i32_0, %c0_i32_1 : i32, i32, i32
  }
  func.func @transform_3(%arg0: i32) -> (i32, i32) {
    %c0_i32 = arith.constant 0 : i32
    %c0_i32_0 = arith.constant 0 : i32
    %c0_i32_1 = arith.constant 0 : i32
    return %c0_i32, %c0_i32_0 : i32, i32
  }
  func.func @transform_4(%arg0: i32) -> (i32, i32) {
    %c0_i32 = arith.constant 0 : i32
    %c0_i32_0 = arith.constant 0 : i32
    %c0_i32_1 = arith.constant 0 : i32
    return %c0_i32, %c0_i32_0 : i32, i32
  }
  func.func @transform_5(%arg0: i32) -> (i32, i32) {
    %c0_i32 = arith.constant 0 : i32
    %c0_i32_0 = arith.constant 0 : i32
    %c0_i32_1 = arith.constant 0 : i32
    return %c0_i32, %c0_i32_0 : i32, i32
  }
  func.func @transform_6(%arg0: i32) -> (i32, i32) {
    %c0_i32 = arith.constant 0 : i32
    %c0_i32_0 = arith.constant 0 : i32
    %c0_i32_1 = arith.constant 0 : i32
    return %c0_i32, %c0_i32_0 : i32, i32
  }
  func.func @transform_7(%arg0: i32) -> (i32, i32, i32) {
    %c0_i32 = arith.constant 0 : i32
    %c0_i32_0 = arith.constant 0 : i32
    %c0_i32_1 = arith.constant 0 : i32
    return %arg0, %c0_i32, %c0_i32_0 : i32, i32, i32
  }
}

</mosaic_0001>

<bundles_post_ra>
// kernel: tpu_custom_call.1
= control target key start
LH: loop header
LB: loop body
LE: loop exit
PB: predicated region body
PF: predicated region fallthrough
CT: control target
= control target key end

     0   :  { %s2357_s0 = inlined_call_operand.hbm [shape: bf16[2,256,128], index: 0, kind: input, shape index: {}]   ;;  %s2358_s1 = inlined_call_operand.hbm [shape: bf16[128,128], index: 1, kind: input, shape index: {}]   ;;  %s2359_s2 = inlined_call_operand.hbm [shape: f32[2,128,128], index: 2, kind: input, shape index: {}]   ;;  %s2360_s3 = inlined_call_operand.hbm [shape: f32[128,128], index: 3, kind: input, shape index: {}]   ;;  %s2361_s4 = inlined_call_operand.vmem [shape: f32[1,128], index: 4, kind: input, shape index: {}]   ;;  %s2362_s5 = inlined_call_operand.hbm [shape: f32[128,128], index: 5, kind: input, shape index: {}]   ;;  %s2363_s6 = inlined_call_operand.vmem [shape: f32[8,128], index: 6, kind: input, shape index: {}]   ;;  %s2364_s7 = inlined_call_operand.hbm [shape: f32[2,1,128], index: 7, kind: output, shape index: {}]  }
   0x1   :  { %2371 = sst [smem:[#allocation16_spill]] %s2358_s1 }
   0x2   :  { %12 = vsyncpa [#allocation3], 0 }
   0x3   :  { %14 = vsyncpa [#allocation3 + $0x1], 0 }
   0x4   :  { %15 = vsyncpa [#allocation6], 0 }
   0x5   :  { %16 = vsyncpa [#allocation9], 0 }
   0x6   :  { %17 = vsyncpa [#allocation4], 0 }
   0x7   :  { %19 = vsyncpa [#allocation4 + $0x1], 0  ;;  %s1995_s24 = smov 0   ;;  %s1997_s25 = smov 0  }
   0x8   :  { %s1999_s26 = smov 0   ;;  %s2001_s27 = smov 0  }
   0x9 LB: > { %s2016_s28 = sadd.s32 4294967295, %s1941_s27   ;;  %s1291_s29 = sadd.s32 4294967294, %s1941_s27   ;;  %s1941_s27 = sphi %s2001_s27, %s2394_s27   ;;  %s1937_s26 = sphi %s1999_s26, %s2393_s26   ;;  %s1933_s25 = sphi %s1997_s25, %s2392_s25   ;;  %s1929_s24 = sphi %s1995_s24, %s2391_s24  }
   0xa   : > { %p45_p0 = scmp.ne.s32.totalorder %s1933_s25, %s1929_s24  ;;  %p2365_p1 = scmp.eq.s32.totalorder %s2016_s28, 0 }
   0xb   : > { %p201_p3 = scmp.eq.s32.totalorder %s1291_s29, 1  ;;  %p1292_p5 = scmp.ge.s32.totalorder %s1941_s27, 1 }
   0xc   : > { %p2025_p4 = por %p2365_p1, %p45_p0  ;;  %p208_p7 = scmp.lt.s32.totalorder %s1941_s27, 3 }
   0xd   : > { %p2030_p6 = por %p201_p3, %p45_p0  ;;  %s1943_s10 = smov [#allocation5]  }
   0xe   : > { %s2372_s30 = scalar_select %p2025_p4, 1, 0 }
   0xf   : > { %s2373_s8 = scalar_select %p2030_p6, 1, 0 }
  0x10   : > { %p2035_p8 = pnand %p1292_p5, %p208_p7  ;;  %s220_s11 = sshll.u32 %s1943_s10, 4  ;;  %s221_s11 = int_to_ptr.vmem [resolvable:$true] %s220_s11 }
  0x11   : > { %s1944_s13 = smov [#allocation8]   ;;  %s1748_s15 = scalar_lea.vmem %s221_s11, 1024 }
  0x12   : > { %s2374_s9 = scalar_select %p2035_p8, 1, 0 }
  0x13   : > { %p1636_p9 = pneg %p2035_p8  ;;  %s246_s14 = sshll.u32 %s1944_s13, 4  ;;  %s247_s14 = int_to_ptr.vmem [resolvable:$true] %s246_s14 }
  0x14   : > { %p1749_p13 = scmp.ne.s32.totalorder %s221_s11, %s1748_s15  ;;  %p1756_p5 = scmp.lt.s32.totalorder %s221_s11, %s221_s11 }
  0x15   : > { %p2044_p11 = pnand %p1636_p9, %p2365_p1  ;;  %p1757_p7 = scmp.lt.s32.totalorder %s1748_s15, %s1748_s15 }
  0x17   : > { %p1739_p12 = pneg %p2044_p11  ;;  %p1758_p10 = por %p1757_p7, %p1756_p5 }
  0x19   : > { %p1751_p0 = pnand %p1749_p13, %p1739_p12 }
  0x1b   : > { %p1752_p3 = pneg %p1751_p0 }
  0x1d   : > { %p1759_p2 = pnand %p1758_p10, %p1752_p3 }
  0x1f   : > { %1762 = shalt.err (!%p1759_p2)
}
  0x20   : > { %s2366_s16 = smov 64   ;;  %s2367_s17 = smov 4  }
  0x21   : > { %s2376_s1 = sld [smem:[#allocation16_spill]]  ;;  %s1947_s20 = smov [#allocation7]  }
  0x22   : > { %s233_s21 = sshll.u32 %s1947_s20, 4  ;;  %s1774_s22 = scalar_lea.vmem %s247_s14, 2048  ;;  %s234_s21 = int_to_ptr.vmem [resolvable:$true] %s233_s21 }
  0x23   : > { %p1775_p9 = scmp.ne.s32.totalorder %s247_s14, %s1774_s22  ;;  %p1782_p13 = scmp.lt.s32.totalorder %s247_s14, %s247_s14 }
  0x24   : > { %p1783_p0 = scmp.lt.s32.totalorder %s1774_s22, %s1774_s22 }
  0x25   : > { %p1777_p2 = pnand %p1775_p9, %p1739_p12 }
  0x26   : > { %p1784_p3 = por %p1783_p0, %p1782_p13 }
  0x27   : > { %1639 = dma.hbm_to_vmem [thread:$0]  (!%p2044_p11), %s2376_s1, 1024, %s221_s11, [#allocation6], %s2366_s16, %s2366_s16, %s2367_s17  }
  0x28   : > { %p1778_p10 = pneg %p1777_p2 }
  0x2a   : > { %p1785_p5 = pnand %p1784_p3, %p1778_p10 }
  0x2c   : > { %1788 = shalt.err (!%p1785_p5)
}
  0x2d   : > { %s1948_s23 = smov 128   ;;  %s1949_s29 = smov 8  }
  0x2e   : > { %1645 = dma.hbm_to_vmem [thread:$0]  (!%p2044_p11), %s2360_s3, 2048, %s247_s14, [#allocation9], %s1948_s23, %s1948_s23, %s1949_s29  }
  0x2f   : > { %s1800_s13 = scalar_lea.vmem %s234_s21, 4096  ;;  %p1808_p1 = scmp.lt.s32.totalorder %s234_s21, %s234_s21 }
  0x30   : > { %p1801_p7 = scmp.ne.s32.totalorder %s234_s21, %s1800_s13  ;;  %p1809_p13 = scmp.lt.s32.totalorder %s1800_s13, %s1800_s13 }
  0x32   : > { %p1803_p9 = pnand %p1801_p7, %p1739_p12  ;;  %p1810_p10 = por %p1809_p13, %p1808_p1 }
  0x34   : > { %p1804_p2 = pneg %p1803_p9 }
  0x36   : > { %p1811_p0 = pnand %p1810_p10, %p1804_p2 }
  0x38   : > { %1814 = shalt.err (!%p1811_p0)
}
  0x39   : > { %1642 = dma.hbm_to_vmem [thread:$0]  (!%p2044_p11), %s2359_s2, 4096, %s234_s21, [#allocation6], %s1948_s23, %s1948_s23, %s1949_s29  }
  0x3a   : > { %s1950_s14 = smov [#allocation10]  }
  0x3b   : > { %s262_s19 = sshll.u32 %s1950_s14, 4  ;;  %s263_s19 = int_to_ptr.vmem [resolvable:$true] %s262_s19 }
  0x3c   : > { %s1826_s20 = scalar_lea.vmem %s263_s19, 2048  ;;  %p1834_p9 = scmp.lt.s32.totalorder %s263_s19, %s263_s19 }
  0x3d   : > { %p1827_p3 = scmp.ne.s32.totalorder %s263_s19, %s1826_s20  ;;  %p1835_p1 = scmp.lt.s32.totalorder %s1826_s20, %s1826_s20 }
  0x3f   : > { %p1829_p5 = pnand %p1827_p3, %p1739_p12  ;;  %p1836_p2 = por %p1835_p1, %p1834_p9 }
  0x41   : > { %p1830_p7 = pneg %p1829_p5 }
  0x43   : > { %p1837_p13 = pnand %p1836_p2, %p1830_p7 }
  0x45   : > { %1840 = shalt.err (!%p1837_p13)
}
  0x46   : > { %1648 = dma.hbm_to_vmem [thread:$0]  (!%p2044_p11), %s2362_s5, 2048, %s263_s19, [#allocation9], %s1948_s23, %s1948_s23, %s1949_s29  }
  0x47   : > { %s2086_s21 = sadd.s32 1, %s1941_s27   ;;  %s32_s11 = sadd.s32 1, %s1937_s26 }
  0x48   : > { %s29_s12 = ssub.s32 %s1941_s27, %s2086_s21  ;;  %p39_p12 = scmp.ne.s32.totalorder %s1937_s26, %s1933_s25 }
  0x49   : > { %p30_p10 = scmp.eq.s32.totalorder %s29_s12, 0  ;;  %p40_p0 = scmp.eq.s32.totalorder %s1941_s27, 0 }
  0x4a   : > { %p2377_p3 = scmp.eq.s32.totalorder %s2016_s28, 1  ;;  %p1661_p7 = scmp.lt.s32.totalorder %s1941_s27, 2 }
  0x4b   : > { %s2102_s15 = scalar_select %p30_p10, %s1937_s26, %s32_s11  }
  0x4c   : > { %p2096_p5 = por %p2377_p3, %p39_p12  ;;  %p41_p9 = por %p40_p0, %p39_p12 }
  0x4d   : > { %s279_s18 = sand.u32 1, %s1937_s26   ;;  %s1335_s23 = sshll.u32 %s1941_s27, 11 }
  0x4e   : > { %s2378_s13 = scalar_select %p2096_p5, 1, 0 }
  0x4f   : > { %s1298_s14 = sshll.u32 %s279_s18, 7  ;;  %s2109_s20 = scalar_lea.hbm %s2357_s0, %s1335_s23 }
  0x50   : > { %s283_s22 = scalar_lea.vmem [#allocation2], %s1298_s14  ;;  %p2113_p11 = pnand %p1661_p7, %p41_p9 }
  0x51   : > { %s290_s10 = sshll.u32 %s283_s22, 4  ;;  %s2117_s11 = scalar_lea.sflag [#allocation3], %s279_s18  ;;  %s2111_s10 = int_to_ptr.vmem [resolvable:$true] %s290_s10 }
  0x52   : > { %s1841_s16 = scalar_lea.hbm %s2109_s20, 2048  ;;  %p1843_p2 = pneg %p2113_p11 }
  0x53   : > { %p1842_p1 = scmp.ne.s32.totalorder %s2109_s20, %s1841_s16  ;;  %s1846_s14 = scalar_lea.hbm %s2357_s0, 4096 }
  0x54   : > { %p1847_p10 = scmp.lt.s32.totalorder %s2109_s20, %s2357_s0  ;;  %p1848_p0 = scmp.lt.s32.totalorder %s1846_s14, %s1841_s16 }
  0x55   : > { %p1844_p13 = pnand %p1843_p2, %p1842_p1 }
  0x56   : > { %p1849_p3 = por %p1848_p0, %p1847_p10 }
  0x57   : > { %p1845_p12 = pneg %p1844_p13 }
  0x59   : > { %p1850_p7 = pnand %p1849_p3, %p1845_p12 }
  0x5b   : > { %1853 = shalt.err (!%p1850_p7)
}
  0x5c   : > { %s1854_s18 = scalar_lea.vmem %s2111_s10, 2048  ;;  %s1951_s17 = smov [#allocation2]  }
  0x5d   : > { %p1855_p9 = scmp.ne.s32.totalorder %s2111_s10, %s1854_s18  ;;  %s1859_s1 = sshll.u32 %s1951_s17, 4  ;;  %s1860_s1 = int_to_ptr.vmem [resolvable:$false] %s1859_s1 }
  0x5e   : > { %s1861_s23 = scalar_lea.vmem %s1860_s1, 4096  ;;  %p1862_p13 = scmp.lt.s32.totalorder %s2111_s10, %s1860_s1 }
  0x5f   : > { %p1857_p6 = pnand %p1855_p9, %p1843_p2  ;;  %p1863_p5 = scmp.lt.s32.totalorder %s1861_s23, %s1854_s18 }
  0x61   : > { %p1858_p1 = pneg %p1857_p6  ;;  %p1864_p4 = por %p1863_p5, %p1862_p13 }
  0x63   : > { %p1865_p8 = pnand %p1864_p4, %p1858_p1 }
  0x65   : > { %1868 = shalt.err (!%p1865_p8)
}
  0x66   : > { %s2380_s16 = smov 4   ;;  %s2381_s29 = smov 64  }
  0x67   : > { %1652 = dma.hbm_to_vmem [thread:$0]  (!%p2113_p11), %s2109_s20, 2048, %s2111_s10, %s2117_s11, %s2381_s29, %s2381_s29, %s2380_s16  }
  0x68   : > { %p2382_p6 = scmp.ne.s32.totalorder %s2374_s9, 0 }
  0x69   : > { %s2144_s17 = sand.u32 (!%p2382_p6), 1, %s1933_s25   ;;  %p2383_p4 = scmp.ne.s32.totalorder (!%p2382_p6), %s2372_s30, 0 }
  0x6a   : > { %302 = sbr.rel (%p2382_p6) target bundleno = 1566 (0x61e), region = 48  ;;  %s1302_s1 = sshll.u32 (!%p2382_p6), %s2144_s17, 7 }
  0x6b   : > { %s305_s14 = scalar_lea.sflag (!%p2382_p6), [#allocation3], %s2144_s17  ;;  %s2148_s19 = scalar_lea.vmem (!%p2382_p6), [#allocation2], %s1302_s1 }
  0x6f   : > { %1912 = dma.done.wait (%p2383_p4), %s305_s14, 2048  }
  0x70   : > { %1914 = vsyncadd (%p2383_p4), %s305_s14, 4294965248  ;;  %p2384_p8 = scmp.eq.s32.totalorder %s2016_s28, 0 }
  0x72   : > { %1916 = dma.done.wait (%p2384_p8), [#allocation6], 5120   ;;  %p2385_p5 = pmov %p2384_p8 }
  0x74   : > { %1918 = vsyncadd (%p2385_p5), [#allocation6], 4294962176  ;;  %p2386_p11 = pmov %p2385_p5 }
  0x75   : > { %p2387_p2 = pmov %p2385_p5 }
  0x76   : > { %1920 = dma.done.wait (%p2386_p11), [#allocation9], 4096  }
  0x77   : > { %1922 = vsyncadd (%p2387_p2), [#allocation9], 4294963200  ;;  %v1709_v0 = vld [vmem:[#allocation5 + $0x38] sm:$0xff]   ;;  %v1710_v1 = vld [vmem:[#allocation5 + $0x30] sm:$0xff]   ;;  %v1952_v24 = vmov 0.0   ;;  %vm1953_vm0 = vmmov 0  }
  0x78   : > { %1428 = vmatprep.subr.bf16.mxu0 %v1709_v0  ;;  %v1711_v2 = vld [vmem:[#allocation5 + $0x28] sm:$0xff]   ;;  %v1712_v3 = vld [vmem:[#allocation5 + $0x20] sm:$0xff]   ;;  %v1713_v5 = vld [vmem:[#allocation5 + $0x18] sm:$0xff]   ;;  %1476 = vmatprep.subr.mxu1 %v1952_v24  ;;  %vm963_vm1 = vcmask 1040384   ;;  %s1332_s12 = sshll.u32 %s2016_s28, 4  ;;  %s353_s11 = scalar_lea.vmem [#allocation11], %s2144_s17 }
  0x79   : > { %1429 = vmatpush3.bf16.msra.mxu0 %v1709_v0  ;;  %v1717_v4 = vld [vmem:[%s2148_s19] sm:$0xff]   ;;  %v1714_v6 = vld [vmem:[#allocation5 + $0x10] sm:$0xff]   ;;  %v1715_v7 = vld [vmem:[#allocation5 + $0x8] sm:$0xff]   ;;  %1508 = vmatprep.mubr.msk.f32.mxu1 %vm1953_vm0, %v1952_v24  ;;  %s1187_s22 = sshll.u32 %s353_s11, 4  ;;  %s1185_s16 = scalar_lea.hbm %s2364_s7, %s1332_s12  ;;  %s1188_s22 = int_to_ptr.vmem [resolvable:$true] %s1187_s22 }
  0x7a   : > { %1430 = vmatprep.subr.bf16.mxu0 %v1710_v1  ;;  %1444 = vmatprep.mubr.bf16.mxu0 %v1717_v4  ;;  %v1716_v8 = vld [vmem:[#allocation5] sm:$0xff]   ;;  %v1718_v9 = vld [vmem:[%s2148_s19 + $0x8] sm:$0xff]   ;;  %v1719_v10 = vld [vmem:[%s2148_s19 + $0x10] sm:$0xff]   ;;  %s1175_s29 = scalar_lea.sflag [#allocation4], %s2144_s17  ;;  %s1869_s1 = scalar_lea.vmem %s1188_s22, 16 }
  0x7b   : > { %v1720_v11 = vld [vmem:[%s2148_s19 + $0x18] sm:$0xff]   ;;  %v1721_v12 = vld [vmem:[%s2148_s19 + $0x20] sm:$0xff]   ;;  %v1722_v13 = vld [vmem:[%s2148_s19 + $0x28] sm:$0xff]   ;;  %p1870_p12 = scmp.ne.s32.totalorder %s1188_s22, %s1869_s1  ;;  %p2388_p10 = scmp.ne.s32.totalorder %s2378_s13, 0 }
  0x7c   : > { %v1723_v14 = vld [vmem:[%s2148_s19 + $0x30] sm:$0xff]   ;;  %v1724_v15 = vld [vmem:[%s2148_s19 + $0x38] sm:$0xff]   ;;  %v1725_v16 = vld [vmem:[%s2148_s19 + $0x40] sm:$0xff]   ;;  %s1954_s14 = smov [#allocation11]  }
  0x7d   : > { %1431 = vmatpush3.bf16.msra.mxu0 %v1710_v1  ;;  %v1726_v17 = vld [vmem:[%s2148_s19 + $0x48] sm:$0xff]   ;;  %v1727_v18 = vld [vmem:[%s2148_s19 + $0x50] sm:$0xff]   ;;  %v1728_v19 = vld [vmem:[%s2148_s19 + $0x58] sm:$0xff]   ;;  %p1871_p0 = pnand %p1870_p12, %p2388_p10 }
  0x7e   : > { %1432 = vmatprep.subr.bf16.mxu0 %v1711_v2  ;;  %v1729_v20 = vld [vmem:[%s2148_s19 + $0x60] sm:$0xff]   ;;  %v1730_v21 = vld [vmem:[%s2148_s19 + $0x68] sm:$0xff]   ;;  %v1731_v22 = vld [vmem:[%s2148_s19 + $0x70] sm:$0xff]  }
  0x7f   : > { %v1732_v23 = vld [vmem:[%s2148_s19 + $0x78] sm:$0xff]   ;;  %v804_v26 = vld [vmem:[#allocation7 + $0x70] sm:$0xff]  ;;  %v803_v27 = vld [vmem:[#allocation7 + $0x68] sm:$0xff]  ;;  %p1872_p3 = pneg %p1871_p0  ;;  %s1873_s19 = sshll.u32 %s1954_s14, 4  ;;  %s1874_s19 = int_to_ptr.vmem [resolvable:$false] %s1873_s19 }
  0x80   : > { %v805_v25 = vld [vmem:[#allocation7 + $0x78] sm:$0xff]  ;;  %v802_v28 = vld [vmem:[#allocation7 + $0x60] sm:$0xff]  ;;  %v800_v30 = vld [vmem:[#allocation7 + $0x50] sm:$0xff]  ;;  %s1875_s28 = scalar_lea.vmem %s1874_s19, 32  ;;  %p1876_p7 = scmp.lt.s32.totalorder %s1188_s22, %s1874_s19 }
  0x81   : > { %1433 = vmatpush3.bf16.msra.mxu0 %v1711_v2  ;;  %1477 = vmatpush3.msra.mxu1 %v805_v25  ;;  %v801_v29 = vld [vmem:[#allocation7 + $0x58] sm:$0xff]  ;;  %v799_v31 = vld [vmem:[#allocation7 + $0x48] sm:$0xff]  ;;  %v798_v32 = vld [vmem:[#allocation7 + $0x40] sm:$0xff]  ;;  %p1877_p9 = scmp.lt.s32.totalorder %s1875_s28, %s1869_s1 }
  0x82   : > { %1434 = vmatprep.subr.bf16.mxu0 %v1712_v3  ;;  %1478 = vmatprep.subr.mxu1 %v1952_v24  ;;  %v797_v33 = vld [vmem:[#allocation7 + $0x38] sm:$0xff]  ;;  %v796_v34 = vld [vmem:[#allocation7 + $0x30] sm:$0xff]  ;;  %v795_v35 = vld [vmem:[#allocation7 + $0x28] sm:$0xff] }
  0x83   : > { %1479 = vmatpush3.msra.mxu1 %v804_v26  ;;  %v794_v36 = vld [vmem:[#allocation7 + $0x20] sm:$0xff]  ;;  %v793_v37 = vld [vmem:[#allocation7 + $0x18] sm:$0xff]  ;;  %v792_v38 = vld [vmem:[#allocation7 + $0x10] sm:$0xff]  ;;  %p1878_p1 = por %p1877_p9, %p1876_p7 }
  0x84   : > { %1480 = vmatprep.subr.mxu1 %v1952_v24  ;;  %v791_v39 = vld [vmem:[#allocation7 + $0x8] sm:$0xff]  ;;  %v790_v40 = vld [vmem:[#allocation7] sm:$0xff] }
  0x85   : > { %1435 = vmatpush3.bf16.msra.mxu0 %v1712_v3  ;;  %1481 = vmatpush3.msra.mxu1 %v803_v27  ;;  %v2203_v43 = vld [vmem:[%s2363_s6] ss:$0 sm:$0xff]  ;;  %p1879_p13 = pnand %p1878_p1, %p1872_p3 }
  0x86   : > { %1436 = vmatprep.subr.bf16.mxu0 %v1713_v5  ;;  %1482 = vmatprep.subr.mxu1 %v1952_v24 }
  0x87   : > { %1483 = vmatpush3.msra.mxu1 %v802_v28 }
  0x88   : > { %1484 = vmatprep.subr.mxu1 %v1952_v24 }
  0x89   : > { %1437 = vmatpush3.bf16.msra.mxu0 %v1713_v5  ;;  %1485 = vmatpush3.msra.mxu1 %v801_v29 }
  0x8a   : > { %1438 = vmatprep.subr.bf16.mxu0 %v1714_v6  ;;  %1486 = vmatprep.subr.mxu1 %v1952_v24 }
  0x8b   : > { %1487 = vmatpush3.msra.mxu1 %v800_v30 }
  0x8c   : > { %1488 = vmatprep.subr.mxu1 %v1952_v24 }
  0x8d   : > { %1439 = vmatpush3.bf16.msra.mxu0 %v1714_v6  ;;  %1489 = vmatpush3.msra.mxu1 %v799_v31 }
  0x8e   : > { %1440 = vmatprep.subr.bf16.mxu0 %v1715_v7  ;;  %1490 = vmatprep.subr.mxu1 %v1952_v24 }
  0x8f   : > { %1491 = vmatpush3.msra.mxu1 %v798_v32 }
  0x90   : > { %1492 = vmatprep.subr.mxu1 %v1952_v24 }
  0x91   : > { %1441 = vmatpush3.bf16.msra.mxu0 %v1715_v7  ;;  %1493 = vmatpush3.msra.mxu1 %v797_v33 }
  0x92   : > { %1442 = vmatprep.subr.bf16.mxu0 %v1716_v8  ;;  %1494 = vmatprep.subr.mxu1 %v1952_v24 }
  0x93   : > { %1495 = vmatpush3.msra.mxu1 %v796_v34 }
  0x94   : > { %1496 = vmatprep.subr.mxu1 %v1952_v24 }
  0x95   : > { %1443 = vmatpush3.bf16.msra.mxu0 %v1716_v8  ;;  %1497 = vmatpush3.msra.mxu1 %v795_v35 }
  0x96   : > { %1546 = vmatprep.subr.mxu0 %v1952_v24  ;;  %1498 = vmatprep.subr.mxu1 %v1952_v24 }
  0x97   : > { %1499 = vmatpush3.msra.mxu1 %v794_v36 }
  0x98   : > { %1445 = vmatmul.mubr.bf16.vlgmr.msra.gmra.mxu0 %v1718_v9  ;;  %1500 = vmatprep.subr.mxu1 %v1952_v24 }
  0x99   : > { %1448 = vmatprep.mubr.bf16.mxu0 %v1719_v10  ;;  %1501 = vmatpush3.msra.mxu1 %v793_v37 }
  0x9a   : > { %1502 = vmatprep.subr.mxu1 %v1952_v24 }
  0x9b   : > { %1503 = vmatpush3.msra.mxu1 %v792_v38 }
  0x9c   : > { %1504 = vmatprep.subr.mxu1 %v1952_v24 }
  0x9d   : > { %1505 = vmatpush3.msra.mxu1 %v791_v39 }
  0x9e   : > { %1506 = vmatprep.subr.mxu1 %v1952_v24 }
  0x9f   : > { %1507 = vmatpush3.msra.mxu1 %v790_v40 }
  0xa0   : > { %1449 = vmatmul.mubr.bf16.gmra.mxu0 %v1720_v11  ;;  %1511 = vmatprep.subr.mxu1 %v1952_v24 }
  0xa1   : > { %1452 = vmatprep.mubr.bf16.mxu0 %v1721_v12 }
  0xa8   : > { %1453 = vmatmul.mubr.bf16.gmra.mxu0 %v1722_v13 }
  0xa9   : > { %1456 = vmatprep.mubr.bf16.mxu0 %v1723_v14 }
  0xb0   : > { %1457 = vmatmul.mubr.bf16.gmra.mxu0 %v1724_v15 }
  0xb1   : > { %1460 = vmatprep.mubr.bf16.mxu0 %v1725_v16 }
  0xb8   : > { %1461 = vmatmul.mubr.bf16.gmra.mxu0 %v1726_v17 }
  0xb9   : > { %1464 = vmatprep.mubr.bf16.mxu0 %v1727_v18 }
  0xc0   : > { %1465 = vmatmul.mubr.bf16.gmra.mxu0 %v1728_v19 }
  0xc1   : > { %1468 = vmatprep.mubr.bf16.mxu0 %v1729_v20 }
  0xc8   : > { %1469 = vmatmul.mubr.bf16.gmra.mxu0 %v1730_v21 }
  0xc9   : > { %1472 = vmatprep.mubr.bf16.mxu0 %v1731_v22 }
  0xd0   : > { %1473 = vmatmul.mubr.bf16.gmra.mxu0 %v1732_v23 }
  0xd1   : > { %1578 = vmatprep.mubr.msk.f32.mxu0 %vm1953_vm0, %v1952_v24 }
 0x158   : > { %v1446_v41 = vpop.f32.mrf.mxu0 }
 0x159   : > { %v602_v47 = vadd.f32 %v1446_v41, %v2203_v43 }
 0x15a   : > { %v593_v42 = vpop.f32.mrf.mxu0 }
 0x15b   : > { %v594_v45 = vadd.f32 %v2203_v43, %v593_v42  ;;  %v722_v54 = vmax.f32 %v602_v47, 0.0 }
 0x15c   : > { %v1447_v44 = vpop.f32.mrf.mxu0 }
 0x15d   : > { %v720_v50 = vmax.f32 %v594_v45, 0.0  ;;  %v605_v51 = vadd.f32 %v1447_v44, %v2203_v43 }
 0x15e   : > { %v596_v46 = vpop.f32.mrf.mxu0 }
 0x15f   : > { %v597_v48 = vadd.f32 %v2203_v43, %v596_v46  ;;  %v723_v58 = vmax.f32 %v605_v51, 0.0 }
 0x160   : > { %v1450_v49 = vpop.f32.mrf.mxu0 }
 0x161   : > { %v721_v52 = vmax.f32 %v597_v48, 0.0  ;;  %v618_v61 = vadd.f32 %v1450_v49, %v2203_v43 }
 0x162   : > { %v609_v53 = vpop.f32.mrf.mxu0 }
 0x163   : > { %v752_v55 = vadd.f32 %v721_v52, %v720_v50  ;;  %v610_v56 = vadd.f32 %v2203_v43, %v609_v53  ;;  %v726_v6 = vmax.f32 %v618_v61, 0.0 }
 0x164   : > { %v1451_v57 = vpop.f32.mrf.mxu0 }
 0x165   : > { %v753_v59 = vadd.f32 %v752_v55, %v722_v54  ;;  %v724_v62 = vmax.f32 %v610_v56, 0.0  ;;  %v621_v3 = vadd.f32 %v1451_v57, %v2203_v43 }
 0x166   : > { %v612_v60 = vpop.f32.mrf.mxu0 }
 0x167   : > { %v754_v63 = vadd.f32 %v753_v59, %v723_v58  ;;  %v613_v0 = vadd.f32 %v2203_v43, %v612_v60  ;;  %v727_v10 = vmax.f32 %v621_v3, 0.0 }
 0x168   : > { %v1454_v1 = vpop.f32.mrf.mxu0 }
 0x169   : > { %v755_v2 = vadd.f32 %v754_v63, %v724_v62  ;;  %v725_v4 = vmax.f32 %v613_v0, 0.0  ;;  %v634_v13 = vadd.f32 %v1454_v1, %v2203_v43 }
 0x16a   : > { %v625_v5 = vpop.f32.mrf.mxu0 }
 0x16b   : > { %v756_v7 = vadd.f32 %v755_v2, %v725_v4  ;;  %v626_v8 = vadd.f32 %v2203_v43, %v625_v5  ;;  %v730_v22 = vmax.f32 %v634_v13, 0.0 }
 0x16c   : > { %v1455_v9 = vpop.f32.mrf.mxu0 }
 0x16d   : > { %v757_v11 = vadd.f32 %v756_v7, %v726_v6  ;;  %v728_v14 = vmax.f32 %v626_v8, 0.0  ;;  %v637_v19 = vadd.f32 %v1455_v9, %v2203_v43 }
 0x16e   : > { %v628_v12 = vpop.f32.mrf.mxu0 }
 0x16f   : > { %v758_v15 = vadd.f32 %v757_v11, %v727_v10  ;;  %v629_v16 = vadd.f32 %v2203_v43, %v628_v12  ;;  %v731_v27 = vmax.f32 %v637_v19, 0.0 }
 0x170   : > { %v1458_v17 = vpop.f32.mrf.mxu0 }
 0x171   : > { %v759_v18 = vadd.f32 %v758_v15, %v728_v14  ;;  %v729_v20 = vmax.f32 %v629_v16, 0.0  ;;  %v650_v30 = vadd.f32 %v1458_v17, %v2203_v43 }
 0x172   : > { %v641_v21 = vpop.f32.mrf.mxu0 }
 0x173   : > { %v760_v23 = vadd.f32 %v759_v18, %v729_v20  ;;  %v642_v25 = vadd.f32 %v2203_v43, %v641_v21  ;;  %v734_v39 = vmax.f32 %v650_v30, 0.0 }
 0x174   : > { %v1459_v26 = vpop.f32.mrf.mxu0 }
 0x175   : > { %v761_v28 = vadd.f32 %v760_v23, %v730_v22  ;;  %v732_v31 = vmax.f32 %v642_v25, 0.0  ;;  %v653_v36 = vadd.f32 %v1459_v26, %v2203_v43 }
 0x176   : > { %v644_v29 = vpop.f32.mrf.mxu0 }
 0x177   : > { %v762_v32 = vadd.f32 %v761_v28, %v731_v27  ;;  %v645_v33 = vadd.f32 %v2203_v43, %v644_v29  ;;  %v735_v44 = vmax.f32 %v653_v36, 0.0 }
 0x178   : > { %v1462_v34 = vpop.f32.mrf.mxu0 }
 0x179   : > { %v763_v35 = vadd.f32 %v762_v32, %v732_v31  ;;  %v733_v37 = vmax.f32 %v645_v33, 0.0  ;;  %v666_v47 = vadd.f32 %v1462_v34, %v2203_v43 }
 0x17a   : > { %v657_v38 = vpop.f32.mrf.mxu0 }
 0x17b   : > { %v764_v40 = vadd.f32 %v763_v35, %v733_v37  ;;  %v658_v41 = vadd.f32 %v2203_v43, %v657_v38  ;;  %v738_v56 = vmax.f32 %v666_v47, 0.0 }
 0x17c   : > { %v1463_v42 = vpop.f32.mrf.mxu0 }
 0x17d   : > { %v765_v45 = vadd.f32 %v764_v40, %v734_v39  ;;  %v736_v48 = vmax.f32 %v658_v41, 0.0  ;;  %v669_v53 = vadd.f32 %v1463_v42, %v2203_v43 }
 0x17e   : > { %v660_v46 = vpop.f32.mrf.mxu0 }
 0x17f   : > { %v766_v49 = vadd.f32 %v765_v45, %v735_v44  ;;  %v661_v50 = vadd.f32 %v2203_v43, %v660_v46  ;;  %v739_v60 = vmax.f32 %v669_v53, 0.0  ;;  %v891_v53 = vld [vmem:[#allocation7 + $0xf0] sm:$0xff] }
 0x180   : > { %v1466_v51 = vpop.f32.mrf.mxu0 }
 0x181   : > { %v767_v52 = vadd.f32 %v766_v49, %v736_v48  ;;  %v737_v54 = vmax.f32 %v661_v50, 0.0  ;;  %v682_v63 = vadd.f32 %v1466_v51, %v2203_v43 }
 0x182   : > { %v673_v55 = vpop.f32.mrf.mxu0 }
 0x183   : > { %v768_v57 = vadd.f32 %v767_v52, %v737_v54  ;;  %v674_v58 = vadd.f32 %v2203_v43, %v673_v55  ;;  %v742_v8 = vmax.f32 %v682_v63, 0.0  ;;  %v892_v52 = vld [vmem:[#allocation7 + $0xf8] sm:$0xff]  ;;  %v889_v54 = vld [vmem:[#allocation7 + $0xe0] sm:$0xff] }
 0x184   : > { %v1467_v59 = vpop.f32.mrf.mxu0  ;;  %v888_v55 = vld [vmem:[#allocation7 + $0xd8] sm:$0xff] }
 0x185   : > { %v769_v61 = vadd.f32 %v768_v57, %v738_v56  ;;  %v740_v0 = vmax.f32 %v674_v58, 0.0  ;;  %v685_v5 = vadd.f32 %v1467_v59, %v2203_v43  ;;  %v887_v56 = vld [vmem:[#allocation7 + $0xd0] sm:$0xff]  ;;  %v886_v57 = vld [vmem:[#allocation7 + $0xc8] sm:$0xff]  ;;  %v885_v58 = vld [vmem:[#allocation7 + $0xc0] sm:$0xff] }
 0x186   : > { %v676_v62 = vpop.f32.mrf.mxu0  ;;  %v884_v59 = vld [vmem:[#allocation7 + $0xb8] sm:$0xff] }
 0x187   : > { %v770_v1 = vadd.f32 %v769_v61, %v739_v60  ;;  %v677_v2 = vadd.f32 %v2203_v43, %v676_v62  ;;  %v743_v12 = vmax.f32 %v685_v5, 0.0  ;;  %v883_v60 = vld [vmem:[#allocation7 + $0xb0] sm:$0xff]  ;;  %v882_v61 = vld [vmem:[#allocation7 + $0xa8] sm:$0xff]  ;;  %v881_v62 = vld [vmem:[#allocation7 + $0xa0] sm:$0xff] }
 0x188   : > { %v1470_v3 = vpop.f32.mrf.mxu0  ;;  %v880_v63 = vld [vmem:[#allocation7 + $0x98] sm:$0xff] }
 0x189   : > { %v771_v4 = vadd.f32 %v770_v1, %v740_v0  ;;  %v741_v6 = vmax.f32 %v677_v2, 0.0  ;;  %v698_v15 = vadd.f32 %v1470_v3, %v2203_v43  ;;  %v879_v0 = vld [vmem:[#allocation7 + $0x90] sm:$0xff]  ;;  %v878_v1 = vld [vmem:[#allocation7 + $0x88] sm:$0xff]  ;;  %v877_v2 = vld [vmem:[#allocation7 + $0x80] sm:$0xff] }
 0x18a   : > { %v689_v7 = vpop.f32.mrf.mxu0  ;;  %v356_v3 = vld [vmem:[%s2363_s6 + $0x1] sm:$0x1] }
 0x18b   : > { %v772_v9 = vadd.f32 %v771_v4, %v741_v6  ;;  %v690_v10 = vadd.f32 %v2203_v43, %v689_v7  ;;  %v746_v25 = vmax.f32 %v698_v15, 0.0  ;;  %v996_v7 = vld [vmem:[#allocation8 + $0x78] sm:$0xff] }
 0x18c   : > { %v1471_v11 = vpop.f32.mrf.mxu0  ;;  %1547 = vmatpush3.msra.mxu0 %v996_v7  ;;  %v988_v15 = vld [vmem:[#allocation8 + $0x38] sm:$0xff] }
 0x18d   : > { %v773_v13 = vadd.f32 %v772_v9, %v742_v8  ;;  %v744_v16 = vmax.f32 %v690_v10, 0.0  ;;  %v701_v21 = vadd.f32 %v1471_v11, %v2203_v43  ;;  %v995_v8 = vld [vmem:[#allocation8 + $0x70] sm:$0xff]  ;;  %1548 = vmatprep.subr.mxu0 %v1952_v24  ;;  %v994_v9 = vld [vmem:[#allocation8 + $0x68] sm:$0xff]  ;;  %v993_v10 = vld [vmem:[#allocation8 + $0x60] sm:$0xff] }
 0x18e   : > { %v692_v14 = vpop.f32.mrf.mxu0  ;;  %1549 = vmatpush3.msra.mxu0 %v995_v8  ;;  %v992_v11 = vld [vmem:[#allocation8 + $0x58] sm:$0xff] }
 0x18f   : > { %v774_v17 = vadd.f32 %v773_v13, %v743_v12  ;;  %v693_v18 = vadd.f32 %v2203_v43, %v692_v14  ;;  %v747_v29 = vmax.f32 %v701_v21, 0.0  ;;  %1550 = vmatprep.subr.mxu0 %v1952_v24  ;;  %v991_v12 = vld [vmem:[#allocation8 + $0x50] sm:$0xff]  ;;  %v990_v13 = vld [vmem:[#allocation8 + $0x48] sm:$0xff]  ;;  %v989_v14 = vld [vmem:[#allocation8 + $0x40] sm:$0xff] }
 0x190   : > { %v1474_v19 = vpop.f32.mrf.mxu0  ;;  %1551 = vmatpush3.msra.mxu0 %v994_v9 }
 0x191   : > { %v775_v20 = vadd.f32 %v774_v17, %v744_v16  ;;  %v745_v22 = vmax.f32 %v693_v18, 0.0  ;;  %v714_v32 = vadd.f32 %v1474_v19, %v2203_v43  ;;  %1552 = vmatprep.subr.mxu0 %v1952_v24  ;;  %v357_v16 = vld [vmem:[%s2363_s6 + $0x2] sm:$0x1] }
 0x192   : > { %v705_v23 = vpop.f32.mrf.mxu0  ;;  %1553 = vmatpush3.msra.mxu0 %v993_v10 }
 0x193   : > { %v776_v26 = vadd.f32 %v775_v20, %v745_v22  ;;  %v706_v27 = vadd.f32 %v2203_v43, %v705_v23  ;;  %v750_v39 = vmax.f32 %v714_v32, 0.0  ;;  %1554 = vmatprep.subr.mxu0 %v1952_v24  ;;  %v987_v23 = vld [vmem:[#allocation8 + $0x30] sm:$0xff] }
 0x194   : > { %v1475_v28 = vpop.f32.mrf.mxu0  ;;  %1555 = vmatpush3.msra.mxu0 %v992_v11  ;;  %v1083_v32 = vld [vmem:[#allocation10 + $0x70] sm:$0xff] }
 0x195   : > { %v777_v30 = vadd.f32 %v776_v26, %v746_v25  ;;  %v748_v33 = vmax.f32 %v706_v27, 0.0  ;;  %v717_v37 = vadd.f32 %v1475_v28, %v2203_v43  ;;  %1556 = vmatprep.subr.mxu0 %v1952_v24  ;;  %v986_v25 = vld [vmem:[#allocation8 + $0x28] sm:$0xff]  ;;  %v985_v26 = vld [vmem:[#allocation8 + $0x20] sm:$0xff]  ;;  %v984_v27 = vld [vmem:[#allocation8 + $0x18] sm:$0xff] }
 0x196   : > { %v708_v31 = vpop.f32.mrf.mxu0  ;;  %1557 = vmatpush3.msra.mxu0 %v991_v12  ;;  %v983_v28 = vld [vmem:[#allocation8 + $0x10] sm:$0xff] }
 0x197   : > { %v778_v34 = vadd.f32 %v777_v30, %v747_v29  ;;  %v709_v35 = vadd.f32 %v2203_v43, %v708_v31  ;;  %v751_v41 = vmax.f32 %v717_v37, 0.0  ;;  %v890_v43 = vld [vmem:[#allocation7 + $0xe8] sm:$0xff]  ;;  %1558 = vmatprep.subr.mxu0 %v1952_v24  ;;  %v981_v30 = vld [vmem:[#allocation8] sm:$0xff]  ;;  %v1084_v31 = vld [vmem:[#allocation10 + $0x78] sm:$0xff] }
 0x198   : > { %1559 = vmatpush3.msra.mxu0 %v990_v13  ;;  %v982_v29 = vld [vmem:[#allocation8 + $0x8] sm:$0xff] }
 0x199   : > { %v779_v36 = vadd.f32 %v778_v34, %v748_v33  ;;  %v749_v38 = vmax.f32 %v709_v35, 0.0  ;;  %1560 = vmatprep.subr.mxu0 %v1952_v24  ;;  %v1082_v33 = vld [vmem:[#allocation10 + $0x68] sm:$0xff]  ;;  %v1081_v34 = vld [vmem:[#allocation10 + $0x60] sm:$0xff]  ;;  %v1080_v35 = vld [vmem:[#allocation10 + $0x58] sm:$0xff] }
 0x19a   : > { %1561 = vmatpush3.msra.mxu0 %v989_v14  ;;  %v1078_v37 = vld [vmem:[#allocation10 + $0x48] sm:$0xff] }
 0x19b   : > { %v780_v40 = vadd.f32 %v779_v36, %v749_v38  ;;  %1562 = vmatprep.subr.mxu0 %v1952_v24  ;;  %v1079_v36 = vld [vmem:[#allocation10 + $0x50] sm:$0xff]  ;;  %v1077_v38 = vld [vmem:[#allocation10 + $0x40] sm:$0xff] }
 0x19c   : > { %1563 = vmatpush3.msra.mxu0 %v988_v15 }
 0x19d   : > { %v781_v42 = vadd.f32 %v780_v40, %v750_v39  ;;  %1564 = vmatprep.subr.mxu0 %v1952_v24  ;;  %v1076_v39 = vld [vmem:[#allocation10 + $0x38] sm:$0xff]  ;;  %v1075_v40 = vld [vmem:[#allocation10 + $0x30] sm:$0xff] }
 0x19e   : > { %1565 = vmatpush3.msra.mxu0 %v987_v23 }
 0x19f   : > { %v782_v44 = vadd.f32 %v781_v42, %v751_v41  ;;  %1566 = vmatprep.subr.mxu0 %v1952_v24  ;;  %v1074_v41 = vld [vmem:[#allocation10 + $0x28] sm:$0xff]  ;;  %v1073_v42 = vld [vmem:[#allocation10 + $0x20] sm:$0xff] }
 0x1a0   : > { %1567 = vmatpush3.msra.mxu0 %v986_v25 }
 0x1a1   : > { %v783_v45 = vrot.slane %v782_v44, 4  ;;  %1568 = vmatprep.subr.mxu0 %v1952_v24 }
 0x1a2   : > { %1569 = vmatpush3.msra.mxu0 %v985_v26 }
 0x1a3   : > { %v784_v46 = vadd.f32 %v783_v45, %v782_v44  ;;  %1570 = vmatprep.subr.mxu0 %v1952_v24  ;;  %v1072_v44 = vld [vmem:[#allocation10 + $0x18] sm:$0xff] }
 0x1a4   : > { %1571 = vmatpush3.msra.mxu0 %v984_v27 }
 0x1a5   : > { %v785_v47 = vrot.slane %v784_v46, 2  ;;  %1572 = vmatprep.subr.mxu0 %v1952_v24 }
 0x1a6   : > { %1573 = vmatpush3.msra.mxu0 %v983_v28 }
 0x1a7   : > { %v786_v48 = vadd.f32 %v785_v47, %v784_v46  ;;  %1574 = vmatprep.subr.mxu0 %v1952_v24 }
 0x1a8   : > { %1575 = vmatpush3.msra.mxu0 %v982_v29 }
 0x1a9   : > { %v787_v49 = vrot.slane %v786_v48, 1  ;;  %1576 = vmatprep.subr.mxu0 %v1952_v24 }
 0x1aa   : > { %1577 = vmatpush3.msra.mxu0 %v981_v30 }
 0x1ab   : > { %v788_v50 = vadd.f32 %v787_v49, %v786_v48 }
 0x1ad   : > { %v789_v51 = vmul.f32 0.00390625, %v788_v50 }
 0x1af   : > { %1509 = vmatmul.mubr.f32.vlgmr.msra.gmra.mxu1 %v789_v51 }
 0x1b0   : > { %1512 = vmatpush3.msra.mxu1 %v892_v52  ;;  %1543 = vmatprep.mubr.msk.f32.mxu1 %vm1953_vm0, %v1952_v24 }
 0x1b1   : > { %1513 = vmatprep.subr.mxu1 %v1952_v24 }
 0x1b2   : > { %1514 = vmatpush3.msra.mxu1 %v891_v53 }
 0x1b3   : > { %1515 = vmatprep.subr.mxu1 %v1952_v24 }
 0x1b4   : > { %1516 = vmatpush3.msra.mxu1 %v890_v43  ;;  %v358_v43 = vld [vmem:[%s2363_s6 + $0x3] sm:$0x1] }
 0x1b5   : > { %1517 = vmatprep.subr.mxu1 %v1952_v24 }
 0x1b6   : > { %1518 = vmatpush3.msra.mxu1 %v889_v54 }
 0x1b7   : > { %1519 = vmatprep.subr.mxu1 %v1952_v24 }
 0x1b8   : > { %1520 = vmatpush3.msra.mxu1 %v888_v55  ;;  %v359_v55 = vld [vmem:[%s2363_s6 + $0x4] sm:$0x1] }
 0x1b9   : > { %1521 = vmatprep.subr.mxu1 %v1952_v24 }
 0x1ba   : > { %1522 = vmatpush3.msra.mxu1 %v887_v56 }
 0x1bb   : > { %1523 = vmatprep.subr.mxu1 %v1952_v24 }
 0x1bc   : > { %1524 = vmatpush3.msra.mxu1 %v886_v57 }
 0x1bd   : > { %1525 = vmatprep.subr.mxu1 %v1952_v24 }
 0x1be   : > { %1526 = vmatpush3.msra.mxu1 %v885_v58  ;;  %v1071_v58 = vld [vmem:[#allocation10 + $0x10] sm:$0xff] }
 0x1bf   : > { %1527 = vmatprep.subr.mxu1 %v1952_v24 }
 0x1c0   : > { %1528 = vmatpush3.msra.mxu1 %v884_v59  ;;  %v1070_v59 = vld [vmem:[#allocation10 + $0x8] sm:$0xff] }
 0x1c1   : > { %1529 = vmatprep.subr.mxu1 %v1952_v24 }
 0x1c2   : > { %1530 = vmatpush3.msra.mxu1 %v883_v60  ;;  %v1069_v60 = vld [vmem:[#allocation10] sm:$0xff] }
 0x1c3   : > { %1531 = vmatprep.subr.mxu1 %v1952_v24 }
 0x1c4   : > { %1532 = vmatpush3.msra.mxu1 %v882_v61  ;;  %v997_v61 = vld [vmem:[%s2361_s4] sm:$0x1] }
 0x1c5   : > { %1533 = vmatprep.subr.mxu1 %v1952_v24 }
 0x1c6   : > { %1534 = vmatpush3.msra.mxu1 %v881_v62 }
 0x1c7   : > { %1535 = vmatprep.subr.mxu1 %v1952_v24 }
 0x1c8   : > { %1536 = vmatpush3.msra.mxu1 %v880_v63 }
 0x1c9   : > { %1537 = vmatprep.subr.mxu1 %v1952_v24 }
 0x1ca   : > { %1538 = vmatpush3.msra.mxu1 %v879_v0 }
 0x1cb   : > { %1539 = vmatprep.subr.mxu1 %v1952_v24 }
 0x1cc   : > { %1540 = vmatpush3.msra.mxu1 %v878_v1 }
 0x1cd   : > { %1541 = vmatprep.subr.mxu1 %v1952_v24 }
 0x1ce   : > { %1542 = vmatpush3.msra.mxu1 %v877_v2  ;;  %v360_v2 = vld [vmem:[%s2363_s6 + $0x5] sm:$0x1] }
 0x1cf   : > { %1581 = vmatprep.subr.mxu1 %v1952_v24 }
 0x26f   : > { %v872_v4 = vpop.f32.mrf.mxu1 }
 0x270   : > { %v873_v5 = vadd.f32 %v872_v4, %v356_v3 }
 0x271   : > { %v1510_v6 = vpop.f32.mrf.mxu1 }
 0x272   : > { %1544 = vmatmul.mubr.f32.vlgmr.msra.gmra.mxu1 %v873_v5 }
 0x273   : > { %1613 = vmatprep.mubr.msk.f32.mxu1 %vm1953_vm0, %v1952_v24  ;;  %1582 = vmatpush3.msra.mxu1 %v1084_v31 }
 0x274   : > { %1583 = vmatprep.subr.mxu1 %v1952_v24 }
 0x275   : > { %1584 = vmatpush3.msra.mxu1 %v1083_v32 }
 0x276   : > { %1585 = vmatprep.subr.mxu1 %v1952_v24 }
 0x277   : > { %1586 = vmatpush3.msra.mxu1 %v1082_v33 }
 0x278   : > { %1587 = vmatprep.subr.mxu1 %v1952_v24 }
 0x279   : > { %1588 = vmatpush3.msra.mxu1 %v1081_v34 }
 0x27a   : > { %1589 = vmatprep.subr.mxu1 %v1952_v24 }
 0x27b   : > { %1590 = vmatpush3.msra.mxu1 %v1080_v35 }
 0x27c   : > { %1591 = vmatprep.subr.mxu1 %v1952_v24 }
 0x27d   : > { %1592 = vmatpush3.msra.mxu1 %v1079_v36 }
 0x27e   : > { %1593 = vmatprep.subr.mxu1 %v1952_v24 }
 0x27f   : > { %1594 = vmatpush3.msra.mxu1 %v1078_v37 }
 0x280   : > { %1595 = vmatprep.subr.mxu1 %v1952_v24 }
 0x281   : > { %1596 = vmatpush3.msra.mxu1 %v1077_v38 }
 0x282   : > { %1597 = vmatprep.subr.mxu1 %v1952_v24 }
 0x283   : > { %1598 = vmatpush3.msra.mxu1 %v1076_v39 }
 0x284   : > { %1599 = vmatprep.subr.mxu1 %v1952_v24 }
 0x285   : > { %1600 = vmatpush3.msra.mxu1 %v1075_v40 }
 0x286   : > { %1601 = vmatprep.subr.mxu1 %v1952_v24 }
 0x287   : > { %1602 = vmatpush3.msra.mxu1 %v1074_v41 }
 0x288   : > { %1603 = vmatprep.subr.mxu1 %v1952_v24 }
 0x289   : > { %1604 = vmatpush3.msra.mxu1 %v1073_v42 }
 0x28a   : > { %1605 = vmatprep.subr.mxu1 %v1952_v24 }
 0x28b   : > { %1606 = vmatpush3.msra.mxu1 %v1072_v44 }
 0x28c   : > { %1607 = vmatprep.subr.mxu1 %v1952_v24 }
 0x28d   : > { %1608 = vmatpush3.msra.mxu1 %v1071_v58 }
 0x28e   : > { %1609 = vmatprep.subr.mxu1 %v1952_v24 }
 0x28f   : > { %1610 = vmatpush3.msra.mxu1 %v1070_v59 }
 0x290   : > { %1611 = vmatprep.subr.mxu1 %v1952_v24 }
 0x291   : > { %1612 = vmatpush3.msra.mxu1 %v1069_v60 }
 0x332   : > { %v959_v17 = vpop.f32.mrf.mxu1 }
 0x333   : > { %v2272_v18 = vadd.f32 %v959_v17, %v357_v16 }
 0x334   : > { %v1545_v19 = vpop.f32.mrf.mxu1 }
 0x335   : > { %v964_v20 = vsel %vm963_vm1, %v2272_v18, 0.0  ;;  %v968_v21 = vmul.f32 %v2272_v18, %v2272_v18 }
 0x336   : > { %965 = vadd.xlane.f32.xlu0 %v964_v20  ;;  %v362_v20 = vld [vmem:[%s2363_s6 + $0x7] sm:$0x1] }
 0x337   : > { %v969_v22 = vsel %vm963_vm1, %v968_v21, 0.0 }
 0x33a   : > { %970 = vadd.xlane.f32.xlu0 %v969_v22 }
 0x3bf   : > { %v966_v45 = vpop.xlane.xlu0 %965 }
 0x3c0   : > { %v967_v46 = vmul.f32 0.03125, %v966_v45 }
 0x3c2   : > { %v973_v48 = vmul.f32 %v967_v46, %v967_v46  ;;  %v975_v52 = vsub.f32 %v2272_v18, %v967_v46  ;;  %v361_v18 = vld [vmem:[%s2363_s6 + $0x6] sm:$0x1] }
 0x3c3   : > { %v971_v47 = vpop.xlane.xlu0 %970 }
 0x3c4   : > { %v972_v49 = vmul.f32 0.03125, %v971_v47 }
 0x3c6   : > { %v974_v50 = vsub.f32 %v972_v49, %v973_v48 }
 0x3c8   : > { %v976_v51 = vadd.f32 1e-05, %v974_v50 }
 0x3ca   : > { %1733 = vrsqrt.f32 %v976_v51 }
 0x3d7   : > { %v1734_v53 = vpop.eup %1733 }
 0x3d8   : > { %v978_v54 = vmul.f32 %v1734_v53, %v975_v52 }
 0x3da   : > { %v979_v56 = vmul.f32 %v978_v54, %v358_v43 }
 0x3dc   : > { %v980_v57 = vadd.f32 %v979_v56, %v359_v55 }
 0x3de   : > { %1579 = vmatmul.mubr.f32.vlgmr.msra.gmra.mxu0 %v980_v57 }
 0x49e   : > { %v1064_v62 = vpop.f32.mrf.mxu0 }
 0x49f   : > { %v1065_v63 = vadd.f32 %v1064_v62, %v997_v61 }
 0x4a0   : > { %v1580_v0 = vpop.f32.mrf.mxu0 }
 0x4a1   : > { %v1068_v1 = vmax.f32 %v1065_v63, 0.0 }
 0x4a3   : > { %1614 = vmatmul.mubr.f32.vlgmr.msra.gmra.mxu1 %v1068_v1 }
 0x563   : > { %v1151_v3 = vpop.f32.mrf.mxu1 }
 0x564   : > { %v1152_v4 = vadd.f32 %v1151_v3, %v360_v2 }
 0x565   : > { %v1615_v5 = vpop.f32.mrf.mxu1 }
 0x566   : > { %v1155_v6 = vadd.f32 %v1152_v4, %v980_v57 }
 0x568   : > { %v1156_v24 = vsel %vm963_vm1, %v1155_v6, 0.0  ;;  %v1160_v7 = vmul.f32 %v1155_v6, %v1155_v6 }
 0x569   : > { %1157 = vadd.xlane.f32.xlu1 %v1156_v24 }
 0x56a   : > { %v1161_v8 = vsel %vm963_vm1, %v1160_v7, 0.0 }
 0x56d   : > { %1162 = vadd.xlane.f32.xlu1 %v1161_v8 }
 0x5f2   : > { %v1158_v9 = vpop.xlane.xlu1 %1157 }
 0x5f3   : > { %v1159_v10 = vmul.f32 0.03125, %v1158_v9 }
 0x5f5   : > { %v1165_v12 = vmul.f32 %v1159_v10, %v1159_v10  ;;  %v1167_v16 = vsub.f32 %v1155_v6, %v1159_v10 }
 0x5f6   : > { %v1163_v11 = vpop.xlane.xlu1 %1162 }
 0x5f7   : > { %v1164_v13 = vmul.f32 0.03125, %v1163_v11 }
 0x5f9   : > { %v1166_v14 = vsub.f32 %v1164_v13, %v1165_v12 }
 0x5fb   : > { %v1168_v15 = vadd.f32 1e-05, %v1166_v14 }
 0x5fd   : > { %1735 = vrsqrt.f32 %v1168_v15 }
 0x60a   : > { %v1736_v17 = vpop.eup %1735 }
 0x60b   : > { %v1170_v19 = vmul.f32 %v1736_v17, %v1167_v16 }
 0x60d   : > { %v1171_v21 = vmul.f32 %v1170_v19, %v361_v18 }
 0x60f   : > { %v1172_v22 = vadd.f32 %v1171_v21, %v362_v20 }
 0x611   : > { %1173 = vst [vmem:[%s353_s11] sm:$0x1] %v1172_v22 }
 0x612   : > { %1882 = shalt.err (!%p1879_p13)
}
 0x613   : > { %s1883_s30 = scalar_lea.hbm %s1185_s16, 16  ;;  %s1887_s20 = scalar_lea.hbm %s2364_s7, 32 }
 0x614   : > { %p1884_p6 = scmp.ne.s32.totalorder %s1185_s16, %s1883_s30  ;;  %p1888_p5 = scmp.lt.s32.totalorder %s1185_s16, %s2364_s7 }
 0x615   : > { %p1889_p11 = scmp.lt.s32.totalorder %s1887_s20, %s1883_s30 }
 0x616   : > { %p1885_p4 = pnand %p1884_p6, %p2388_p10 }
 0x617   : > { %p1890_p2 = por %p1889_p11, %p1888_p5 }
 0x618   : > { %p1886_p8 = pneg %p1885_p4 }
 0x61a   : > { %p1891_p12 = pnand %p1890_p2, %p1886_p8 }
 0x61c   : > { %1894 = shalt.err (!%p1891_p12)
}
 0x61d   : > { %1634 = dma.vmem_to_hbm [thread:$0]  (%p2388_p10), %s1188_s22, 16, %s1185_s16, %s1175_s29  }
 0x61e PF: > { %s1199_s11 = sand.u32 1, %s1929_s24   ;;  %p2389_p0 = scmp.ne.s32.totalorder %s2373_s8, 0 }
 0x61f   : > { %p2390_p3 = scmp.ge.s32.totalorder %s1941_s27, 2  ;;  %s1200_s18 = scalar_lea.sflag [#allocation4], %s1199_s11 }
 0x621   : > { %p1654_p7 = pnand %p2390_p3, %p2389_p0 }
 0x623   : > { %p1655_p9 = pneg %p1654_p7 }
 0x625   : > { %1924 = dma.done.wait (%p1655_p9), %s1200_s18, 16  }
 0x626   : > { %1926 = vsyncadd (%p1655_p9), %s1200_s18, 4294967280  ;;  %p22_p1 = scmp.ge.s32.totalorder %s2086_s21, 4   ;;  %s2391_s24 = smov %s1933_s25 }
 0x627   : > { %s2392_s25 = smov %s1937_s26  ;;  %s2393_s26 = smov %s2102_s15 }
 0x628   : > { %s2394_s27 = smov %s2086_s21  ;;  %24 = sbr.rel (!%p22_p1) target bundleno = 9 (0x9), region = 110 }
 0x62d   :  { %1204 = vsyncpa [#allocation3], 1 }
 0x62e   :  { %1206 = vsyncpa [#allocation3 + $0x1], 1 }
 0x62f   :  { %1207 = vsyncpa [#allocation6], 1 }
 0x630   :  { %1208 = vsyncpa [#allocation9], 1 }
 0x631   :  { %1209 = vsyncpa [#allocation4], 1 }
 0x632   :  { %1211 = vsyncpa [#allocation4 + $0x1], 1 }

</bundles_post_ra>
